<compile_context>
chip_gen: v6e
topology: v6e:2x2x1
jax: 0.10.0
libtpu: 0.0.40
codegen_flags: <defaults>
</compile_context>

<pallas_src>
import functools
import math

import jax
import jax.numpy as jnp
from jax import lax
from jax.experimental import pallas as pl
from jax.experimental.pallas import tpu as pltpu

HIDDEN = 256
BN_EPS = 1e-5


def _delft_kernel(x_ref, w1_ref, t1_ref, w2_ref, wd_ref, bias_ref,
                  prob_ref, y_ref, *, chunk):
    """One (C, TN) pixel tile: prob = softplus(conv chain + residual); y = x*prob.

    The TN lanes are processed in `chunk`-lane sub-tiles so the (256, chunk) hidden
    activation stays small instead of round-tripping a (256, TN) f32 slab through
    VMEM; the post-relu hidden is bf16 (MXU accumulates in f32 regardless).
    """
    w1 = w1_ref[...]        # (256, C)  f32, BN1 + conv1 bias folded in
    t1 = t1_ref[...]        # (256, 1)  f32, folded shift
    w2 = w2_ref[...]        # (1, 256)  bf16
    wd = wd_ref[...]        # (C, 1)    f32, downsample weight
    bias = bias_ref[0]      # scalar    f32, b2 + bd

    nchunks = x_ref.shape[-1] // chunk   # static

    def body(j, carry):
        off = pl.multiple_of(j * chunk, chunk)
        xc = x_ref[:, pl.ds(off, chunk)]                                   # (C, chunk)

        # conv1 (1x1, C -> 256) with BN1 + bias folded into the weights; relu.
        h = jnp.dot(w1, xc.astype(jnp.float32),
                    preferred_element_type=jnp.float32)                    # (256, chunk)
        h = jnp.maximum(h + t1, 0.0).astype(jnp.bfloat16)                  # halve vst/vld

        # conv2 (256 -> 1): single K=256 MXU pass, lane-dense (1, chunk) result.
        out = jnp.dot(w2, h, preferred_element_type=jnp.float32)           # (1, chunk)

        # downsample residual (C -> 1): C is tiny, keep it on the VPU.
        # The BN on this branch is discarded by the module's typo — skipped on purpose.
        res = jnp.sum(xc.astype(jnp.float32) * wd, axis=0, keepdims=True)  # (1, chunk)

        o = out + res + bias
        # torch Softplus (beta=1, threshold=20), overflow-safe.
        p = jnp.where(o > 20.0, o, jnp.log1p(jnp.exp(jnp.minimum(o, 20.0))))

        prob_ref[:, pl.ds(off, chunk)] = p
        y_ref[:, pl.ds(off, chunk)] = (xc * p).astype(y_ref.dtype)         # fused gate
        return carry

    lax.fori_loop(0, nchunks, body, 0, unroll=True)


def delft_block_forward(x_nchw, params, k, tn=4096, chunk=512):
    b, c, h, w = x_nchw.shape
    hw = h * w
    x_dtype = x_nchw.dtype

    # Channel-major, pixel-on-lane layout: (b, C, H*W).  Pure reshape of NCHW — no
    # transpose, no jnp.pad copy (ragged last grid tile handled by Pallas).
    x_cm = x_nchw.reshape(b, c, hw)

    # Lane-dense pixel tile: multiple of 128, capped by the 128-rounded row length.
    tn = min(tn, ((hw + 127) // 128) * 128)
    # Make sure v7x's two TensorCores both get work when the grid would be 1 step.
    if b * ((hw + tn - 1) // tn) < 2 and tn >= 256:
        tn = ((tn // 2 + 127) // 128) * 128
    chunk = math.gcd(tn, chunk)          # sub-tile size; always divides tn
    n_tiles = (hw + tn - 1) // tn

    # Fold BN1 stats + conv1 bias into the conv1 weights (inference form).
    s1 = params["bn1_gamma"] / jnp.sqrt(params["bn1_var"] + BN_EPS)            # (256,)
    w1p = (params["w1"].T * s1[:, None]).astype(jnp.float32)                   # (256, C)
    t1p = (s1 * params["b1"] + params["bn1_beta"]
           - params["bn1_mean"] * s1).reshape(HIDDEN, 1).astype(jnp.float32)   # (256, 1)
    w2r = params["w2"].T.astype(jnp.bfloat16)                                  # (1, 256)
    wdc = params["wd"].astype(jnp.float32)                                     # (C, 1)
    bias = (params["b2"] + params["bd"]).reshape(1).astype(jnp.float32)        # (1,)

    bytes_per = jnp.dtype(jnp.float32).itemsize
    cost = pl.CostEstimate(
        flops=2 * b * hw * HIDDEN * (c + 1) + 6 * b * hw * c,
        transcendentals=2 * b * hw,
        bytes_accessed=(2 * b * c * hw + b * hw) * bytes_per,   # x read + y + prob write
    )

    rep = lambda bi, ti: (0, 0)          # replicated parameter blocks
    grid = (b, n_tiles)

    prob, y_cm = pl.pallas_call(
        functools.partial(_delft_kernel, chunk=chunk),
        out_shape=(jax.ShapeDtypeStruct((b, 1, hw), jnp.float32),
                   jax.ShapeDtypeStruct((b, c, hw), x_dtype)),
        grid_spec=pltpu.PrefetchScalarGridSpec(
            num_scalar_prefetch=0,
            grid=grid,
            in_specs=[
                pl.BlockSpec((None, c, tn), lambda bi, ti: (bi, 0, ti)),   # x tile (C, TN)
                pl.BlockSpec((HIDDEN, c), rep),                            # folded conv1 weight
                pl.BlockSpec((HIDDEN, 1), rep),                            # folded conv1 shift
                pl.BlockSpec((1, HIDDEN), rep),                            # conv2 weight row
                pl.BlockSpec((c, 1), rep),                                 # downsample weight
                pl.BlockSpec(memory_space=pltpu.MemorySpace.SMEM),         # b2 + bd scalar
            ],
            out_specs=[
                pl.BlockSpec((None, 1, tn), lambda bi, ti: (bi, 0, ti)),   # prob
                pl.BlockSpec((None, c, tn), lambda bi, ti: (bi, 0, ti)),   # y = x * prob
            ],
        ),
        compiler_params=pltpu.CompilerParams(
            dimension_semantics=("parallel", "parallel"),
            vmem_limit_bytes=32 * 1024 * 1024),
        cost_estimate=cost,
    )(x_cm, w1p, t1p, w2r, wdc, bias)

    prob = prob[:, 0, :]                 # (b, H*W)
    y = y_cm.reshape(b, c, h, w)         # pure reshape back to NCHW

    # softmax is monotone, so top-k indices computed on prob directly match
    # torch.topk(softmax(prob)).indices (int32 vs torch's int64; ties may break in a
    # different order for exactly-equal values).
    _, indices = jax.lax.top_k(prob, k)
    return y, indices


def _reference_forward(x_nchw, params):
    """Pure-JAX reference of the module's forward (gated output only)."""
    b, c, h, w = x_nchw.shape
    hp = jax.lax.Precision.HIGHEST
    x2 = jnp.transpose(x_nchw, (0, 2, 3, 1)).reshape(-1, c).astype(jnp.float32)
    h1 = jnp.dot(x2, params["w1"], precision=hp) + params["b1"]
    s1 = params["bn1_gamma"] / jnp.sqrt(params["bn1_var"] + BN_EPS)
    h1 = (h1 - params["bn1_mean"]) * s1 + params["bn1_beta"]
    h1 = jnp.maximum(h1, 0.0)
    out = jnp.dot(h1, params["w2"], precision=hp) + params["b2"]
    res = jnp.dot(x2, params["wd"], precision=hp) + params["bd"]
    o = out + res
    prob = jnp.where(o > 20.0, o, jnp.log1p(jnp.exp(jnp.minimum(o, 20.0))))
    y2 = x2 * prob
    return jnp.transpose(y2.reshape(b, h, w, c), (0, 3, 1, 2))


def init_params(key, c):
    """Deterministic synthetic parameters matching the module's shapes."""
    ks = jax.random.split(key, 10)
    w1 = jax.random.normal(ks[0], (c, HIDDEN), jnp.float32) * 0.1   # conv1 (C->256)
    b1 = jax.random.normal(ks[1], (HIDDEN,), jnp.float32) * 0.05
    w2 = jax.random.normal(ks[2], (HIDDEN, 1), jnp.float32) * 0.1   # conv2 (256->1)
    b2 = jax.random.normal(ks[3], (1,), jnp.float32) * 0.05
    wd = jax.random.normal(ks[4], (c, 1), jnp.float32) * 0.1        # downsample (C->1)
    bd = jax.random.normal(ks[5], (1,), jnp.float32) * 0.05
    bn1_gamma = 1.0 + 0.1 * jax.random.normal(ks[6], (HIDDEN,), jnp.float32)
    bn1_beta = 0.05 * jax.random.normal(ks[7], (HIDDEN,), jnp.float32)
    bn1_mean = 0.1 * jax.random.normal(ks[8], (HIDDEN,), jnp.float32)
    bn1_var = 0.5 + jax.random.uniform(ks[9], (HIDDEN,), jnp.float32)
    return dict(w1=w1, b1=b1, w2=w2, b2=b2, wd=wd, bd=bd,
                bn1_gamma=bn1_gamma, bn1_beta=bn1_beta,
                bn1_mean=bn1_mean, bn1_var=bn1_var)


if __name__ == "__main__":
    B, C, H, W = 2, 4, 16, 16
    K = 8

    key = jax.random.PRNGKey(0)
    kx, kp = jax.random.split(key)
    x = jax.random.normal(kx, (B, C, H, W), jnp.float32)
    params = init_params(kp, C)

    fwd = jax.jit(functools.partial(delft_block_forward, k=K))
    y, indices = fwd(x, params)
    jax.block_until_ready((y, indices))

    assert y.shape == (B, C, H, W) and y.dtype == jnp.float32
    assert indices.shape == (B, K) and indices.dtype == jnp.int32
    assert bool(jnp.all((indices >= 0) & (indices < H * W)))

    y_ref = _reference_forward(x, params)
    assert jnp.allclose(y, y_ref, atol=5e-3, rtol=5e-3), "mismatch vs reference"

    print("KERNEL_OK")
</pallas_src>

<mosaic_0001>
module attributes {stable_mosaic.version = 11 : i64} {
  func.func @_delft_kernel(%arg0: i32, %arg1: i32, %arg2: memref<1x4x256xf32, #tpu.memory_space<vmem>>, %arg3: memref<256x4xf32, #tpu.memory_space<vmem>>, %arg4: memref<256x1xf32, #tpu.memory_space<vmem>>, %arg5: memref<1x256xbf16, #tpu.memory_space<vmem>>, %arg6: memref<4x1xf32, #tpu.memory_space<vmem>>, %arg7: memref<1xf32, #tpu.memory_space<smem>>, %arg8: memref<1x1x256xf32, #tpu.memory_space<vmem>>, %arg9: memref<1x4x256xf32, #tpu.memory_space<vmem>>) attributes {dimension_semantics = [#tpu.dimension_semantics<parallel>, #tpu.dimension_semantics<parallel>], iteration_bounds = array<i64: 2, 1>, scalar_prefetch = 0 : i64, scratch_operands = 0 : i64, tpu.core_type = #tpu.core_type<tc>, window_params = [{transform_indices = @transform_0, window_bounds = array<i64: 1, 4, 256>}, {pipeline_mode = #tpu.pipeline_mode<synchronous>, transform_indices = @transform_1, window_bounds = array<i64: 256, 4>}, {pipeline_mode = #tpu.pipeline_mode<synchronous>, transform_indices = @transform_2, window_bounds = array<i64: 256, 1>}, {pipeline_mode = #tpu.pipeline_mode<synchronous>, transform_indices = @transform_3, window_bounds = array<i64: 1, 256>}, {pipeline_mode = #tpu.pipeline_mode<synchronous>, transform_indices = @transform_4, window_bounds = array<i64: 4, 1>}, {transform_indices = @transform_5, window_bounds = array<i64: 1>}, {transform_indices = @transform_6, window_bounds = array<i64: 1, 1, 256>}, {transform_indices = @transform_7, window_bounds = array<i64: 1, 4, 256>}]} {
    %c0 = arith.constant 0 : index
    %c0_0 = arith.constant 0 : index
    %0 = vector.load %arg3[%c0, %c0_0] : memref<256x4xf32, #tpu.memory_space<vmem>>, vector<256x4xf32>
    %c0_1 = arith.constant 0 : index
    %c0_2 = arith.constant 0 : index
    %1 = vector.load %arg4[%c0_1, %c0_2] : memref<256x1xf32, #tpu.memory_space<vmem>>, vector<256x1xf32>
    %c0_3 = arith.constant 0 : index
    %c0_4 = arith.constant 0 : index
    %2 = vector.load %arg5[%c0_3, %c0_4] : memref<1x256xbf16, #tpu.memory_space<vmem>>, vector<1x256xbf16>
    %c0_5 = arith.constant 0 : index
    %c0_6 = arith.constant 0 : index
    %3 = vector.load %arg6[%c0_5, %c0_6] : memref<4x1xf32, #tpu.memory_space<vmem>>, vector<4x1xf32>
    %c0_7 = arith.constant 0 : index
    %4 = memref.load %arg7[%c0_7] : memref<1xf32, #tpu.memory_space<smem>>
    %c0_i32 = arith.constant 0 : i32
    %c256_i32 = arith.constant 256 : i32
    %5 = arith.muli %c0_i32, %c256_i32 : i32
    %6 = tpu.assume_multiple %5, 256 : i32
    %c0_8 = arith.constant 0 : index
    %c0_9 = arith.constant 0 : index
    %7 = arith.index_cast %6 : i32 to index
    %8 = vector.load %arg2[%c0_8, %c0_9, %7] : memref<1x4x256xf32, #tpu.memory_space<vmem>>, vector<1x4x256xf32>
    %9 = vector.shape_cast %8 : vector<1x4x256xf32> to vector<4x256xf32>
    %cst = arith.constant dense<0.000000e+00> : vector<256x256xf32>
    %10 = tpu.matmul %0, %9, %cst {dimension_numbers = #tpu.dot_dimension_numbers<[1], [0], [0], [1], [0, 0, 1, 1], [], []>} : vector<256x4xf32>, vector<4x256xf32>, vector<256x256xf32> -> vector<256x256xf32>
    %11 = vector.broadcast %1 : vector<256x1xf32> to vector<256x256xf32>
    %12 = arith.addf %10, %11 : vector<256x256xf32>
    %cst_10 = arith.constant 0.000000e+00 : f32
    %13 = vector.broadcast %cst_10 : f32 to vector<256x256xf32>
    %14 = arith.maximumf %12, %13 : vector<256x256xf32>
    %15 = arith.truncf %14 : vector<256x256xf32> to vector<256x256xbf16>
    %cst_11 = arith.constant dense<0.000000e+00> : vector<1x256xf32>
    %16 = tpu.matmul %2, %15, %cst_11 {dimension_numbers = #tpu.dot_dimension_numbers<[1], [0], [0], [1], [0, 0, 1, 1], [], []>} : vector<1x256xbf16>, vector<256x256xbf16>, vector<1x256xf32> -> vector<1x256xf32>
    %17 = vector.broadcast %3 : vector<4x1xf32> to vector<4x256xf32>
    %18 = arith.mulf %9, %17 : vector<4x256xf32>
    %cst_12 = arith.constant dense<0.000000e+00> : vector<256xf32>
    %19 = vector.multi_reduction <add>, %18, %cst_12 [0] : vector<4x256xf32> to vector<256xf32>
    %20 = vector.shape_cast %19 : vector<256xf32> to vector<1x256xf32>
    %21 = arith.addf %16, %20 : vector<1x256xf32>
    %22 = vector.broadcast %4 : f32 to vector<1x256xf32>
    %23 = arith.addf %21, %22 : vector<1x256xf32>
    %cst_13 = arith.constant 2.000000e+01 : f32
    %24 = vector.broadcast %cst_13 : f32 to vector<1x256xf32>
    %25 = arith.cmpf ogt, %23, %24 : vector<1x256xf32>
    %cst_14 = arith.constant 2.000000e+01 : f32
    %26 = vector.broadcast %cst_14 : f32 to vector<1x256xf32>
    %27 = arith.minimumf %23, %26 : vector<1x256xf32>
    %28 = math.exp %27 : vector<1x256xf32>
    %29 = math.log1p %28 : vector<1x256xf32>
    %30 = arith.select %25, %23, %29 : vector<1x256xi1>, vector<1x256xf32>
    %c0_15 = arith.constant 0 : index
    %c0_16 = arith.constant 0 : index
    %31 = arith.index_cast %6 : i32 to index
    %32 = vector.load %arg8[%c0_15, %c0_16, %31] : memref<1x1x256xf32, #tpu.memory_space<vmem>>, vector<1x1x256xf32>
    %33 = vector.shape_cast %32 : vector<1x1x256xf32> to vector<1x256xf32>
    %34 = vector.shape_cast %30 : vector<1x256xf32> to vector<1x1x256xf32>
    tpu.vector_store %arg8[%c0_15, %c0_16, %31], %34 {strides = array<i32>} : memref<1x1x256xf32, #tpu.memory_space<vmem>>, vector<1x1x256xf32>,
    %35 = vector.broadcast %30 : vector<1x256xf32> to vector<4x256xf32>
    %36 = arith.mulf %9, %35 : vector<4x256xf32>
    %c0_17 = arith.constant 0 : index
    %c0_18 = arith.constant 0 : index
    %37 = arith.index_cast %6 : i32 to index
    %38 = vector.load %arg9[%c0_17, %c0_18, %37] : memref<1x4x256xf32, #tpu.memory_space<vmem>>, vector<1x4x256xf32>
    %39 = vector.shape_cast %38 : vector<1x4x256xf32> to vector<4x256xf32>
    %40 = vector.shape_cast %36 : vector<4x256xf32> to vector<1x4x256xf32>
    tpu.vector_store %arg9[%c0_17, %c0_18, %37], %40 {strides = array<i32>} : memref<1x4x256xf32, #tpu.memory_space<vmem>>, vector<1x4x256xf32>,
    %c1_i32 = arith.constant 1 : i32
    return
  }
  func.func @transform_0(%arg0: i32, %arg1: i32) -> (i32, i32, i32) {
    %c0_i32 = arith.constant 0 : i32
    %c0_i32_0 = arith.constant 0 : i32
    return %arg0, %c0_i32, %arg1 : i32, i32, i32
  }
  func.func @transform_1(%arg0: i32, %arg1: i32) -> (i32, i32) {
    %c0_i32 = arith.constant 0 : i32
    %c0_i32_0 = arith.constant 0 : i32
    %c0_i32_1 = arith.constant 0 : i32
    return %c0_i32, %c0_i32_0 : i32, i32
  }
  func.func @transform_2(%arg0: i32, %arg1: i32) -> (i32, i32) {
    %c0_i32 = arith.constant 0 : i32
    %c0_i32_0 = arith.constant 0 : i32
    %c0_i32_1 = arith.constant 0 : i32
    return %c0_i32, %c0_i32_0 : i32, i32
  }
  func.func @transform_3(%arg0: i32, %arg1: i32) -> (i32, i32) {
    %c0_i32 = arith.constant 0 : i32
    %c0_i32_0 = arith.constant 0 : i32
    %c0_i32_1 = arith.constant 0 : i32
    return %c0_i32, %c0_i32_0 : i32, i32
  }
  func.func @transform_4(%arg0: i32, %arg1: i32) -> (i32, i32) {
    %c0_i32 = arith.constant 0 : i32
    %c0_i32_0 = arith.constant 0 : i32
    %c0_i32_1 = arith.constant 0 : i32
    return %c0_i32, %c0_i32_0 : i32, i32
  }
  func.func @transform_5(%arg0: i32, %arg1: i32) -> i32 {
    %c0_i32 = arith.constant 0 : i32
    %c0_i32_0 = arith.constant 0 : i32
    return %c0_i32 : i32
  }
  func.func @transform_6(%arg0: i32, %arg1: i32) -> (i32, i32, i32) {
    %c0_i32 = arith.constant 0 : i32
    %c0_i32_0 = arith.constant 0 : i32
    return %arg0, %c0_i32, %arg1 : i32, i32, i32
  }
  func.func @transform_7(%arg0: i32, %arg1: i32) -> (i32, i32, i32) {
    %c0_i32 = arith.constant 0 : i32
    %c0_i32_0 = arith.constant 0 : i32
    return %arg0, %c0_i32, %arg1 : i32, i32, i32
  }
}

</mosaic_0001>

<bundles_post_ra>
// kernel: delft_block_forward.1
= control target key start
LH: loop header
LB: loop body
LE: loop exit
PB: predicated region body
PF: predicated region fallthrough
CT: control target
= control target key end

     0   :  { %s1481_s26 = smov 0   ;;  %s1483_s27 = smov 0   ;;  %s1998_s0 = inlined_call_operand.vmem [shape: f32[2,4,256], index: 0, kind: input, shape index: {}]   ;;  %s1999_s1 = inlined_call_operand.vmem [shape: f32[256,4], index: 1, kind: input, shape index: {}]   ;;  %s2000_s2 = inlined_call_operand.vmem [shape: f32[256,1], index: 2, kind: input, shape index: {}]   ;;  %s2001_s3 = inlined_call_operand.vmem [shape: bf16[1,256], index: 3, kind: input, shape index: {}]   ;;  %s2002_s4 = inlined_call_operand.vmem [shape: f32[4,1], index: 4, kind: input, shape index: {}]   ;;  %s2003_s5 = inlined_call_operand.<no memory space> [shape: f32[1], index: 5, kind: input, shape index: {}]   ;;  %s2004_s6 = inlined_call_operand.vmem [shape: f32[2,1,256], index: 6, kind: output, shape index: {0}]   ;;  %s2005_s7 = inlined_call_operand.vmem [shape: f32[2,4,256], index: 7, kind: output, shape index: {1}]  }
   0x1   :  { %13 = sst [smem:[#allocation2]] %s2003_s5  ;;  %s1485_s28 = smov 0  }
   0x2 LB: > { %s31_s5 = sadd.s32 1, %s1428_s27  ;;  %p1325_p0 = scmp.ge.s32.totalorder %s1432_s28, 1  ;;  %s1432_s28 = sphi %s1485_s28, %s19_s28   ;;  %s1428_s27 = sphi %s1483_s27, %s2041_s27   ;;  %s1424_s26 = sphi %s1481_s26, %s2040_s26  }
   0x3   : > { %p33_p1 = scmp.ge.s32.totalorder %s31_s5, 2  ;;  %p264_p2 = scmp.lt.s32.totalorder %s1432_s28, 3 }
   0x5   : > { %s2043_s5 = smov (%p33_p1, %s31_s5), 0  ;;  %p265_p3 = pnand %p1325_p0, %p264_p2 }
   0x7   : > { %268 = sbr.rel (%p265_p3) target bundleno = 623 (0x26f), region = 44 }
   0xc   : > { %p313_p4 = scmp.lt.s32.totalorder %s1424_s26, 1  ;;  %v1434_v0 = vmov 0.0   ;;  %v1435_v1 = vmov 0   ;;  %v387_v2 = vld [vmem:[%s2000_s2 + $0x70] sm:$0xff]  ;;  %v385_v3 = vld [vmem:[%s2000_s2 + $0x60] sm:$0xff]  ;;  %vm668_vm0 = vcmask 1043456  }
   0xd   : > { %737 = vmatprep.mubr.f32.mxu0 %v1434_v0  ;;  %1398 = vset.pattern.permute.xlu0 %v1435_v1  ;;  %v388_v5 = vld [vmem:[%s2000_s2 + $0x78] sm:$0xff]  ;;  %v386_v7 = vld [vmem:[%s2000_s2 + $0x68] sm:$0xff]  ;;  %v341_v8 = vld [vmem:[%s1999_s1] sm:$0xff]  ;;  %vm571_vm1 = vcmask 31744   ;;  %s407_s16 = sld [smem:[#allocation2]] }
   0xe   : > { %s2045_s26 = smov (!%p313_p4, %s1424_s26), 1  ;;  %1399 = vset.pattern.permute.xlu1 %v1435_v1  ;;  %481 = vperm.xlu0 %1398, %v387_v2   ;;  %v383_v9 = vld [vmem:[%s2000_s2 + $0x50] sm:$0xff]  ;;  %v384_v10 = vld [vmem:[%s2000_s2 + $0x58] sm:$0xff]  ;;  %v342_v11 = vld [vmem:[%s1999_s1 + $0x8] sm:$0xff] }
   0xf   : > { %s1368_s29 = sshll.u32 %s2045_s26, 3  ;;  %471 = vperm.xlu1 %1399, %v385_v3   ;;  %v381_v12 = vld [vmem:[%s2000_s2 + $0x40] sm:$0xff]  ;;  %v382_v13 = vld [vmem:[%s2000_s2 + $0x48] sm:$0xff]  ;;  %v343_v14 = vld [vmem:[%s1999_s1 + $0x10] sm:$0xff]  ;;  %s1328_s17 = sshll.u32 %s2045_s26, 1 }
  0x10   : > { %s1511_s11 = scalar_lea.vmem %s1998_s0, %s1368_s29  ;;  %v379_v15 = vld [vmem:[%s2000_s2 + $0x30] sm:$0xff]  ;;  %v380_v16 = vld [vmem:[%s2000_s2 + $0x38] sm:$0xff]  ;;  %v377_v18 = vld [vmem:[%s2000_s2 + $0x20] sm:$0xff]  ;;  %s329_s20 = scalar_lea.vmem %s2004_s6, %s1328_s17 }
  0x11   : > { %v1517_v4 = vld [vmem:[%s1511_s11] sm:$0xff]  ;;  %v344_v17 = vld [vmem:[%s1999_s1 + $0x18] sm:$0xff]  ;;  %v378_v19 = vld [vmem:[%s2000_s2 + $0x28] sm:$0xff]  ;;  %s339_s23 = scalar_lea.vmem %s2005_s7, %s1368_s29 }
  0x12   : > { %2019 = vst [vmem:[#allocation3_spill] sm:$0xff] %v1517_v4  ;;  %v570_v6 = vcombine.high %v1517_v4, %v1517_v4  ;;  %486 = vperm.xlu0 %1398, %v388_v5   ;;  %v345_v20 = vld [vmem:[%s1999_s1 + $0x20] sm:$0xff]  ;;  %v375_v21 = vld [vmem:[%s2000_s2 + $0x10] sm:$0xff]  ;;  %v376_v22 = vld [vmem:[%s2000_s2 + $0x18] sm:$0xff] }
  0x13   : > { %476 = vperm.xlu1 %1399, %v386_v7   ;;  %v346_v23 = vld [vmem:[%s1999_s1 + $0x28] sm:$0xff]  ;;  %v373_v24 = vld [vmem:[%s2000_s2] sm:$0xff]  ;;  %v347_v26 = vld [vmem:[%s1999_s1 + $0x30] sm:$0xff] }
  0x14   : > { %1331 = vmatprep.subr.msk.mxu0 %vm668_vm0, %v570_v6  ;;  %v374_v25 = vld [vmem:[%s2000_s2 + $0x8] sm:$0xff]  ;;  %v403_v27 = vld [vmem:[%s2000_s2 + $0xf0] sm:$0xff]  ;;  %v404_v28 = vld [vmem:[%s2000_s2 + $0xf8] sm:$0xff] }
  0x15   : > { %1332 = vmatpush1.msk.msra.mxu0 %vm668_vm0, %v1517_v4  ;;  %v348_v29 = vld [vmem:[%s1999_s1 + $0x38] sm:$0xff]  ;;  %v401_v30 = vld [vmem:[%s2000_s2 + $0xe0] sm:$0xff]  ;;  %v402_v31 = vld [vmem:[%s2000_s2 + $0xe8] sm:$0xff] }
  0x16   : > { %1333 = vmatmul.mubr.msk.f32.vlgmr.msra.gmra.mxu0 %vm571_vm1, %v341_v8  ;;  %461 = vperm.xlu0 %1398, %v383_v9   ;;  %v349_v32 = vld [vmem:[%s1999_s1 + $0x40] sm:$0xff]  ;;  %v399_v33 = vld [vmem:[%s2000_s2 + $0xd0] sm:$0xff]  ;;  %v400_v34 = vld [vmem:[%s2000_s2 + $0xd8] sm:$0xff] }
  0x17   : > { %743 = vmatprep.mubr.f32.mxu0 %v1434_v0  ;;  %466 = vperm.xlu1 %1399, %v384_v10   ;;  %v350_v35 = vld [vmem:[%s1999_s1 + $0x48] sm:$0xff]  ;;  %v397_v36 = vld [vmem:[%s2000_s2 + $0xc0] sm:$0xff]  ;;  %v351_v38 = vld [vmem:[%s1999_s1 + $0x50] sm:$0xff] }
  0x18   : > { %v398_v37 = vld [vmem:[%s2000_s2 + $0xc8] sm:$0xff]  ;;  %v395_v39 = vld [vmem:[%s2000_s2 + $0xb0] sm:$0xff]  ;;  %v396_v40 = vld [vmem:[%s2000_s2 + $0xb8] sm:$0xff] }
  0x19   : > { %v352_v41 = vld [vmem:[%s1999_s1 + $0x58] sm:$0xff]  ;;  %v393_v42 = vld [vmem:[%s2000_s2 + $0xa0] sm:$0xff]  ;;  %v394_v43 = vld [vmem:[%s2000_s2 + $0xa8] sm:$0xff] }
  0x1a   : > { %1334 = vmatmul.mubr.msk.f32.gmra.mxu0 %vm571_vm1, %v342_v11  ;;  %451 = vperm.xlu0 %1398, %v381_v12   ;;  %v353_v44 = vld [vmem:[%s1999_s1 + $0x60] sm:$0xff]  ;;  %v391_v45 = vld [vmem:[%s2000_s2 + $0x90] sm:$0xff]  ;;  %v392_v46 = vld [vmem:[%s2000_s2 + $0x98] sm:$0xff] }
  0x1b   : > { %749 = vmatprep.mubr.f32.mxu0 %v1434_v0  ;;  %456 = vperm.xlu1 %1399, %v382_v13   ;;  %v354_v47 = vld [vmem:[%s1999_s1 + $0x68] sm:$0xff]  ;;  %v389_v48 = vld [vmem:[%s2000_s2 + $0x80] sm:$0xff]  ;;  %v355_v50 = vld [vmem:[%s1999_s1 + $0x70] sm:$0xff] }
  0x1c   : > { %v390_v49 = vld [vmem:[%s2000_s2 + $0x88] sm:$0xff]  ;;  %v406_v51 = vld [vmem:[%s2002_s4] sm:$0xf]  ;;  %v356_v52 = vld [vmem:[%s1999_s1 + $0x78] sm:$0xff] }
  0x1d   : > { %v357_v53 = vld [vmem:[%s1999_s1 + $0x80] sm:$0xff]  ;;  %v358_v54 = vld [vmem:[%s1999_s1 + $0x88] sm:$0xff]  ;;  %v359_v55 = vld [vmem:[%s1999_s1 + $0x90] sm:$0xff] }
  0x1e   : > { %1335 = vmatmul.mubr.msk.f32.gmra.mxu0 %vm571_vm1, %v343_v14  ;;  %441 = vperm.xlu0 %1398, %v379_v15   ;;  %v360_v56 = vld [vmem:[%s1999_s1 + $0x98] sm:$0xff]  ;;  %v361_v57 = vld [vmem:[%s1999_s1 + $0xa0] sm:$0xff]  ;;  %v362_v58 = vld [vmem:[%s1999_s1 + $0xa8] sm:$0xff] }
  0x1f   : > { %755 = vmatprep.mubr.f32.mxu0 %v1434_v0  ;;  %446 = vperm.xlu1 %1399, %v380_v16   ;;  %v363_v59 = vld [vmem:[%s1999_s1 + $0xb0] sm:$0xff]  ;;  %v364_v60 = vld [vmem:[%s1999_s1 + $0xb8] sm:$0xff]  ;;  %v365_v61 = vld [vmem:[%s1999_s1 + $0xc0] sm:$0xff] }
  0x20   : > { %v366_v62 = vld [vmem:[%s1999_s1 + $0xc8] sm:$0xff]  ;;  %v367_v63 = vld [vmem:[%s1999_s1 + $0xd0] sm:$0xff]  ;;  %v368_v1 = vld [vmem:[%s1999_s1 + $0xd8] sm:$0xff] }
  0x21   : > { %v369_v2 = vld [vmem:[%s1999_s1 + $0xe0] sm:$0xff]  ;;  %v370_v3 = vld [vmem:[%s1999_s1 + $0xe8] sm:$0xff]  ;;  %v371_v5 = vld [vmem:[%s1999_s1 + $0xf0] sm:$0xff] }
  0x22   : > { %1336 = vmatmul.mubr.msk.f32.gmra.mxu0 %vm571_vm1, %v344_v17  ;;  %431 = vperm.xlu0 %1398, %v377_v18   ;;  %v372_v6 = vld [vmem:[%s1999_s1 + $0xf8] sm:$0xff] }
  0x23   : > { %761 = vmatprep.mubr.f32.mxu0 %v1434_v0  ;;  %436 = vperm.xlu1 %1399, %v378_v19  }
  0x26   : > { %1337 = vmatmul.mubr.msk.f32.gmra.mxu0 %vm571_vm1, %v345_v20  ;;  %421 = vperm.xlu0 %1398, %v375_v21  }
  0x27   : > { %767 = vmatprep.mubr.f32.mxu0 %v1434_v0  ;;  %426 = vperm.xlu1 %1399, %v376_v22  }
  0x2a   : > { %1338 = vmatmul.mubr.msk.f32.gmra.mxu0 %vm571_vm1, %v346_v23  ;;  %411 = vperm.xlu0 %1398, %v373_v24  }
  0x2b   : > { %773 = vmatprep.mubr.f32.mxu0 %v1434_v0  ;;  %416 = vperm.xlu1 %1399, %v374_v25  }
  0x2e   : > { %1339 = vmatmul.mubr.msk.f32.gmra.mxu0 %vm571_vm1, %v347_v26  ;;  %561 = vperm.xlu0 %1398, %v403_v27  }
  0x2f   : > { %779 = vmatprep.mubr.f32.mxu0 %v1434_v0  ;;  %566 = vperm.xlu1 %1399, %v404_v28  }
  0x32   : > { %1340 = vmatmul.mubr.msk.f32.gmra.mxu0 %vm571_vm1, %v348_v29  ;;  %551 = vperm.xlu0 %1398, %v401_v30  }
  0x33   : > { %785 = vmatprep.mubr.f32.mxu0 %v1434_v0  ;;  %556 = vperm.xlu1 %1399, %v402_v31  }
  0x36   : > { %1341 = vmatmul.mubr.msk.f32.gmra.mxu0 %vm571_vm1, %v349_v32  ;;  %541 = vperm.xlu0 %1398, %v399_v33  }
  0x37   : > { %791 = vmatprep.mubr.f32.mxu0 %v1434_v0  ;;  %546 = vperm.xlu1 %1399, %v400_v34  }
  0x3a   : > { %1342 = vmatmul.mubr.msk.f32.gmra.mxu0 %vm571_vm1, %v350_v35  ;;  %531 = vperm.xlu0 %1398, %v397_v36  }
  0x3b   : > { %797 = vmatprep.mubr.f32.mxu0 %v1434_v0  ;;  %536 = vperm.xlu1 %1399, %v398_v37  }
  0x3e   : > { %1343 = vmatmul.mubr.msk.f32.gmra.mxu0 %vm571_vm1, %v351_v38  ;;  %521 = vperm.xlu0 %1398, %v395_v39  }
  0x3f   : > { %803 = vmatprep.mubr.f32.mxu0 %v1434_v0  ;;  %526 = vperm.xlu1 %1399, %v396_v40  }
  0x42   : > { %1344 = vmatmul.mubr.msk.f32.gmra.mxu0 %vm571_vm1, %v352_v41  ;;  %511 = vperm.xlu0 %1398, %v393_v42  }
  0x43   : > { %809 = vmatprep.mubr.f32.mxu0 %v1434_v0  ;;  %516 = vperm.xlu1 %1399, %v394_v43  }
  0x46   : > { %1345 = vmatmul.mubr.msk.f32.gmra.mxu0 %vm571_vm1, %v353_v44  ;;  %501 = vperm.xlu0 %1398, %v391_v45  }
  0x47   : > { %815 = vmatprep.mubr.f32.mxu0 %v1434_v0  ;;  %506 = vperm.xlu1 %1399, %v392_v46  }
  0x4a   : > { %1346 = vmatmul.mubr.msk.f32.gmra.mxu0 %vm571_vm1, %v354_v47  ;;  %491 = vperm.xlu0 %1398, %v389_v48  }
  0x4b   : > { %821 = vmatprep.mubr.f32.mxu0 %v1434_v0  ;;  %496 = vperm.xlu1 %1399, %v390_v49  }
  0x4e   : > { %1347 = vmatmul.mubr.msk.f32.gmra.mxu0 %vm571_vm1, %v355_v50  ;;  %1028 = vperm.xlu0 %1398, %v406_v51  }
  0x4f   : > { %827 = vmatprep.mubr.f32.mxu0 %v1434_v0 }
  0x52   : > { %1348 = vmatmul.mubr.msk.f32.gmra.mxu0 %vm571_vm1, %v356_v52 }
  0x53   : > { %833 = vmatprep.mubr.f32.mxu0 %v1434_v0 }
  0x56   : > { %1349 = vmatmul.mubr.msk.f32.gmra.mxu0 %vm571_vm1, %v357_v53 }
  0x57   : > { %839 = vmatprep.mubr.f32.mxu0 %v1434_v0 }
  0x5a   : > { %1350 = vmatmul.mubr.msk.f32.gmra.mxu0 %vm571_vm1, %v358_v54 }
  0x5b   : > { %845 = vmatprep.mubr.f32.mxu0 %v1434_v0 }
  0x5e   : > { %1351 = vmatmul.mubr.msk.f32.gmra.mxu0 %vm571_vm1, %v359_v55 }
  0x5f   : > { %851 = vmatprep.mubr.f32.mxu0 %v1434_v0 }
  0x62   : > { %1352 = vmatmul.mubr.msk.f32.gmra.mxu0 %vm571_vm1, %v360_v56 }
  0x63   : > { %857 = vmatprep.mubr.f32.mxu0 %v1434_v0 }
  0x66   : > { %1353 = vmatmul.mubr.msk.f32.gmra.mxu0 %vm571_vm1, %v361_v57 }
  0x67   : > { %863 = vmatprep.mubr.f32.mxu0 %v1434_v0 }
  0x6a   : > { %1354 = vmatmul.mubr.msk.f32.gmra.mxu0 %vm571_vm1, %v362_v58  ;;  %v2006_v58 = vlaneseq }
  0x6b   : > { %869 = vmatprep.mubr.f32.mxu0 %v1434_v0 }
  0x6e   : > { %1355 = vmatmul.mubr.msk.f32.gmra.mxu0 %vm571_vm1, %v363_v59 }
  0x6f   : > { %875 = vmatprep.mubr.f32.mxu0 %v1434_v0 }
  0x72   : > { %1356 = vmatmul.mubr.msk.f32.gmra.mxu0 %vm571_vm1, %v364_v60 }
  0x73   : > { %881 = vmatprep.mubr.f32.mxu0 %v1434_v0 }
  0x76   : > { %1357 = vmatmul.mubr.msk.f32.gmra.mxu0 %vm571_vm1, %v365_v61  ;;  %v1436_v61 = vmov 1966171168  }
  0x77   : > { %887 = vmatprep.mubr.f32.mxu0 %v1434_v0 }
  0x7a   : > { %1358 = vmatmul.mubr.msk.f32.gmra.mxu0 %vm571_vm1, %v366_v62  ;;  %v1066_v62 = vunpack.c.l.s4 %v1436_v61 }
  0x7b   : > { %893 = vmatprep.mubr.f32.mxu0 %v1434_v0 }
  0x7e   : > { %1359 = vmatmul.mubr.msk.f32.gmra.mxu0 %vm571_vm1, %v367_v63 }
  0x7f   : > { %899 = vmatprep.mubr.f32.mxu0 %v1434_v0 }
  0x82   : > { %1360 = vmatmul.mubr.msk.f32.gmra.mxu0 %vm571_vm1, %v368_v1 }
  0x83   : > { %905 = vmatprep.mubr.f32.mxu0 %v1434_v0 }
  0x86   : > { %1361 = vmatmul.mubr.msk.f32.gmra.mxu0 %vm571_vm1, %v369_v2  ;;  %v1833_v2 = vshrl.u32 %v2006_v58, 7 }
  0x87   : > { %911 = vmatprep.mubr.f32.mxu0 %v1434_v0 }
  0x88   : > { %2020 = vst [vmem:[#allocation4_spill] sm:$0xff] %v1833_v2 }
  0x89   : > { %v1776_v7 = vpop.permute.xlu0 %481 }
  0x8a   : > { %1362 = vmatmul.mubr.msk.f32.gmra.mxu0 %vm571_vm1, %v370_v3  ;;  %v1778_v8 = vpop.permute.xlu1 %471  ;;  %v1067_v3 = vunpack.c.0.s8 %v1066_v62 }
  0x8b   : > { %917 = vmatprep.mubr.f32.mxu0 %v1434_v0 }
  0x8d   : > { %v1780_v9 = vpop.permute.xlu0 %486 }
  0x8e   : > { %1363 = vmatmul.mubr.msk.f32.gmra.mxu0 %vm571_vm1, %v371_v5  ;;  %v1782_v10 = vpop.permute.xlu1 %476  ;;  %v1838_v5 = vld.sshfl [vmem:[%s2001_s3] sm:$0x11 pattern:$0x75316420] }
  0x8f   : > { %923 = vmatprep.mubr.f32.mxu0 %v1434_v0  ;;  %2021 = vst [vmem:[#allocation5_spill] sm:$0xff] %v1838_v5 }
  0x91   : > { %v1784_v11 = vpop.permute.xlu0 %461 }
  0x92   : > { %1364 = vmatmul.mubr.msk.f32.gmra.mxu0 %vm571_vm1, %v372_v6  ;;  %v1786_v12 = vpop.permute.xlu1 %466 }
  0x95   : > { %v1788_v13 = vpop.permute.xlu0 %451 }
  0x96   : > { %v1790_v0 = vpop.permute.xlu1 %456 }
  0x99   : > { %v1792_v14 = vpop.permute.xlu0 %441 }
  0x9a   : > { %v1794_v15 = vpop.permute.xlu1 %446 }
  0x9d   : > { %v1796_v16 = vpop.permute.xlu0 %431 }
  0x9e   : > { %v1798_v17 = vpop.permute.xlu1 %436 }
  0xa1   : > { %v422_v18 = vpop.permute.xlu0 %421 }
  0xa2   : > { %v427_v19 = vpop.permute.xlu1 %426 }
  0xa5   : > { %v412_v20 = vpop.permute.xlu0 %411 }
  0xa6   : > { %v417_v23 = vpop.permute.xlu1 %416 }
  0xa9   : > { %v1816_v54 = vpop.permute.xlu0 %561 }
  0xaa   : > { %v1820_v56 = vpop.permute.xlu1 %566 }
  0xad   : > { %v1826_v60 = vpop.permute.xlu0 %551 }
  0xae   : > { %v1830_v1 = vpop.permute.xlu1 %556 }
  0xd6   : > { %v739_v21 = vpop.f32.mrf.mxu0 }
  0xd7   : > { %v740_v24 = vadd.f32 %v739_v21, %v412_v20  ;;  %v1847_v21 = vpop.permute.xlu0 %541 }
  0xd8   : > { %v741_v22 = vpop.f32.mrf.mxu0 }
  0xd9   : > { %v742_v26 = vadd.f32 %v741_v22, %v412_v20  ;;  %v930_v29 = vmax.f32 %v740_v24, 0.0  ;;  %v1852_v24 = vpop.permute.xlu1 %546 }
  0xda   : > { %v745_v25 = vpop.f32.mrf.mxu0 }
  0xdb   : > { %v746_v27 = vadd.f32 %v745_v25, %v417_v23  ;;  %v931_v33 = vmax.f32 %v742_v26, 0.0 }
  0xdc   : > { %v747_v28 = vpop.f32.mrf.mxu0 }
  0xdd   : > { %v932_v30 = vmax.f32 %v746_v27, 0.0  ;;  %v748_v31 = vadd.f32 %v747_v28, %v417_v23  ;;  %v1854_v27 = vpop.permute.xlu0 %531 }
  0xde   : > { %v751_v32 = vpop.f32.mrf.mxu0  ;;  %2023 = vst [vmem:[#allocation7_spill] sm:$0xff] %v1854_v27 }
  0xdf   : > { %v1800_v34 = vpack.c.bf16 %v932_v30, %v930_v29  ;;  %v933_v35 = vmax.f32 %v748_v31, 0.0  ;;  %v752_v38 = vadd.f32 %v751_v32, %v422_v18  ;;  %v1856_v29 = vpop.permute.xlu1 %536 }
  0xe0   : > { %v753_v36 = vpop.f32.mrf.mxu0  ;;  %2024 = vst [vmem:[#allocation8_spill] sm:$0xff] %v1856_v29 }
  0xe1   : > { %v1802_v37 = vpack.c.bf16 %v933_v35, %v931_v33  ;;  %v754_v40 = vadd.f32 %v753_v36, %v422_v18  ;;  %v934_v43 = vmax.f32 %v752_v38, 0.0  ;;  %v1064_v18 = vcombine.high %v1838_v5, %v1838_v5  ;;  %v1858_v32 = vpop.permute.xlu0 %521 }
  0xe2   : > { %v757_v39 = vpop.f32.mrf.mxu0  ;;  %2025 = vst [vmem:[#allocation9_spill] sm:$0xff] %v1858_v32 }
  0xe3   : > { %v758_v41 = vadd.f32 %v757_v39, %v427_v19  ;;  %v935_v47 = vmax.f32 %v754_v40, 0.0  ;;  %v1860_v35 = vpop.permute.xlu1 %526 }
  0xe4   : > { %v759_v42 = vpop.f32.mrf.mxu0  ;;  %2026 = vst [vmem:[#allocation10_spill] sm:$0xff] %v1860_v35 }
  0xe5   : > { %v936_v44 = vmax.f32 %v758_v41, 0.0  ;;  %v760_v45 = vadd.f32 %v759_v42, %v427_v19  ;;  %v1845_v19 = vsub.s32 %v1067_v3, %v1833_v2  ;;  %v1862_v39 = vpop.permute.xlu0 %511 }
  0xe6   : > { %v1804_v46 = vpop.f32.mrf.mxu0  ;;  %2027 = vst [vmem:[#allocation11_spill] sm:$0xff] %v1862_v39 }
  0xe7   : > { %v1806_v48 = vpack.c.bf16 %v936_v44, %v934_v43  ;;  %v937_v49 = vmax.f32 %v760_v45, 0.0  ;;  %2022 = vst [vmem:[#allocation6_spill] sm:$0xff] %v1845_v19  ;;  %v1078_v22 = vrot.slane %v1064_v18, %v1845_v19  ;;  %v1864_v41 = vpop.permute.xlu1 %516 }
  0xe8   : > { %v1808_v50 = vpop.f32.mrf.mxu0  ;;  %2028 = vst [vmem:[#allocation12_spill] sm:$0xff] %v1864_v41 }
  0xe9   : > { %v1810_v51 = vpack.c.bf16 %v937_v49, %v935_v47  ;;  %1113 = vmatprep.mubr.bf16.mxu1 %v1078_v22  ;;  %v1866_v44 = vpop.permute.xlu0 %501 }
  0xea   : > { %v1812_v52 = vpop.f32.mrf.mxu0 }
  0xeb   : > { %v1868_v47 = vpop.permute.xlu1 %506 }
  0xec   : > { %v1814_v53 = vpop.f32.mrf.mxu0 }
  0xed   : > { %v492_v5 = vpop.permute.xlu0 %491 }
  0xee   : > { %v1818_v55 = vpop.f32.mrf.mxu0 }
  0xf0   : > { %v1822_v57 = vpop.f32.mrf.mxu0 }
  0xf2   : > { %v1824_v59 = vpop.f32.mrf.mxu0 }
  0xf4   : > { %v1828_v63 = vpop.f32.mrf.mxu0 }
  0xf6   : > { %v1840_v6 = vpop.f32.mrf.mxu0 }
  0xf8   : > { %v789_v20 = vpop.f32.mrf.mxu0 }
  0xfa   : > { %v1850_v23 = vpop.f32.mrf.mxu0 }
  0xfc   : > { %v795_v25 = vpop.f32.mrf.mxu0 }
  0xfe   : > { %v799_v26 = vpop.f32.mrf.mxu0 }
 0x100   : > { %v801_v28 = vpop.f32.mrf.mxu0 }
 0x102   : > { %v805_v30 = vpop.f32.mrf.mxu0 }
 0x104   : > { %v807_v31 = vpop.f32.mrf.mxu0 }
 0x105   : > { %v808_v39 = vadd.f32 %v807_v31, %v1786_v12 }
 0x106   : > { %v811_v33 = vpop.f32.mrf.mxu0 }
 0x108   : > { %v813_v36 = vpop.f32.mrf.mxu0 }
 0x109   : > { %v814_v22 = vadd.f32 %v813_v36, %v1778_v8 }
 0x10a   : > { %v817_v38 = vpop.f32.mrf.mxu0 }
 0x10b   : > { %v818_v4 = vadd.f32 %v817_v38, %v1782_v10  ;;  %v955_v36 = vmax.f32 %v814_v22, 0.0  ;;  %v806_v38 = vadd.f32 %v805_v30, %v1786_v12 }
 0x10c   : > { %v819_v40 = vpop.f32.mrf.mxu0 }
 0x10d   : > { %v820_v49 = vadd.f32 %v819_v40, %v1782_v10  ;;  %v796_v10 = vadd.f32 %v795_v25, %v1790_v0 }
 0x10e   : > { %v823_v42 = vpop.f32.mrf.mxu0 }
 0x10f   : > { %v824_v3 = vadd.f32 %v823_v42, %v1776_v7  ;;  %v957_v41 = vmax.f32 %v820_v49, 0.0  ;;  %v802_v42 = vadd.f32 %v801_v28, %v1784_v11  ;;  %v953_v49 = vmax.f32 %v808_v39, 0.0 }
 0x110   : > { %v825_v43 = vpop.f32.mrf.mxu0  ;;  %v790_v28 = vadd.f32 %v789_v20, %v1788_v13 }
 0x111   : > { %v826_v61 = vadd.f32 %v825_v43, %v1776_v7  ;;  %v812_v43 = vadd.f32 %v811_v33, %v1778_v8  ;;  %v497_v7 = vpop.permute.xlu1 %496  ;;  %v784_v8 = vadd.f32 %v1828_v63, %v1794_v15  ;;  %v951_v25 = vmax.f32 %v802_v42, 0.0 }
 0x112   : > { %v829_v45 = vpop.f32.mrf.mxu0 }
 0x113   : > { %v830_v62 = vadd.f32 %v829_v45, %v1780_v9  ;;  %v959_v40 = vmax.f32 %v826_v61, 0.0  ;;  %v958_v45 = vmax.f32 %v824_v3, 0.0  ;;  %v1007_v61 = vpack.c.bf16 %v957_v41, %v955_v36 }
 0x114   : > { %v831_v18 = vpop.f32.mrf.mxu0  ;;  %v1005_v63 = vpack.c.bf16 %v953_v49, %v951_v25  ;;  %v945_v42 = vmax.f32 %v784_v8, 0.0 }
 0x115   : > { %v832_v58 = vadd.f32 %v831_v18, %v1780_v9  ;;  %v960_v2 = vmax.f32 %v830_v62, 0.0  ;;  %v956_v62 = vmax.f32 %v818_v4, 0.0 }
 0x116   : > { %v835_v19 = vpop.f32.mrf.mxu0 }
 0x117   : > { %v961_v32 = vmax.f32 %v832_v58, 0.0  ;;  %v836_v27 = vadd.f32 %v835_v19, %v492_v5  ;;  %v1008_v31 = vpack.c.bf16 %v960_v2, %v958_v45  ;;  %v800_v19 = vadd.f32 %v799_v26, %v1784_v11 }
 0x118   : > { %v837_v35 = vpop.f32.mrf.mxu0  ;;  %v794_v2 = vadd.f32 %v1850_v23, %v1790_v0  ;;  %v788_v26 = vadd.f32 %v1840_v6, %v1788_v13  ;;  %v782_v45 = vadd.f32 %v1824_v59, %v1794_v15 }
 0x119   : > { %v1009_v9 = vpack.c.bf16 %v961_v32, %v959_v40  ;;  %v838_v58 = vadd.f32 %v837_v35, %v492_v5  ;;  %v954_v32 = vmax.f32 %v812_v43, 0.0  ;;  %v962_v12 = vmax.f32 %v836_v27, 0.0 }
 0x11a   : > { %v841_v18 = vpop.f32.mrf.mxu0  ;;  %v949_v5 = vmax.f32 %v796_v10, 0.0  ;;  %v952_v35 = vmax.f32 %v806_v38, 0.0  ;;  %v950_v22 = vmax.f32 %v800_v19, 0.0  ;;  %v947_v40 = vmax.f32 %v790_v28, 0.0 }
 0x11b   : > { %v842_v29 = vadd.f32 %v841_v18, %v497_v7  ;;  %1081 = vmatprep.subr.bf16.mxu1 %v1009_v9  ;;  %v1006_v39 = vpack.c.bf16 %v956_v62, %v954_v32  ;;  %v963_v3 = vmax.f32 %v838_v58, 0.0  ;;  %v772_v43 = vadd.f32 %v1814_v53, %v1798_v17 }
 0x11c   : > { %v843_v33 = vpop.f32.mrf.mxu0  ;;  %1082 = vmatpush1.bf16.msra.mxu1 %v1008_v31  ;;  %v1004_v13 = vpack.c.bf16 %v952_v35, %v950_v22  ;;  %v1003_v36 = vpack.c.bf16 %v949_v5, %v947_v40  ;;  %v766_v10 = vadd.f32 %v1808_v50, %v1796_v16  ;;  %v776_v38 = vadd.f32 %v1818_v55, %v1792_v14 }
 0x11d   : > { %v964_v4 = vmax.f32 %v842_v29, 0.0  ;;  %v844_v30 = vadd.f32 %v843_v33, %v497_v7  ;;  %1083 = vmatprep.subr.bf16.mxu1 %v1007_v61  ;;  %v778_v29 = vadd.f32 %v1822_v57, %v1792_v14  ;;  %v948_v7 = vmax.f32 %v794_v2, 0.0 }
 0x11e   : > { %v847_v41 = vpop.f32.mrf.mxu0  ;;  %v946_v62 = vmax.f32 %v788_v26, 0.0  ;;  %v941_v49 = vmax.f32 %v772_v43, 0.0  ;;  %v944_v61 = vmax.f32 %v782_v45, 0.0  ;;  %v764_v19 = vadd.f32 %v1804_v46, %v1796_v16 }
 0x11f   : > { %v1888_v20 = vpack.c.bf16 %v964_v4, %v962_v12  ;;  %v965_v11 = vmax.f32 %v844_v30, 0.0  ;;  %v848_v23 = vadd.f32 %v847_v41, %v1866_v44  ;;  %v943_v18 = vmax.f32 %v778_v29, 0.0 }
 0x120   : > { %v849_v27 = vpop.f32.mrf.mxu0  ;;  %1084 = vmatpush1.bf16.msra.mxu1 %v1006_v39  ;;  %v1002_v58 = vpack.c.bf16 %v948_v7, %v946_v62  ;;  %v942_v32 = vmax.f32 %v776_v38, 0.0  ;;  %v938_v30 = vmax.f32 %v764_v19, 0.0 }
 0x121   : > { %v1894_v0 = vpack.c.bf16 %v965_v11, %v963_v3  ;;  %1085 = vmatprep.subr.bf16.mxu1 %v1005_v63  ;;  %v850_v9 = vadd.f32 %v849_v27, %v1866_v44  ;;  %v966_v15 = vmax.f32 %v848_v23, 0.0  ;;  %v770_v44 = vadd.f32 %v1812_v52, %v1798_v17 }
 0x122   : > { %v853_v6 = vpop.f32.mrf.mxu0  ;;  %v1001_v50 = vpack.c.bf16 %v945_v42, %v943_v18  ;;  %v1000_v52 = vpack.c.bf16 %v944_v61, %v942_v32  ;;  %v2030_v32 = vld [vmem:[#allocation7_spill] sm:$0xff] }
 0x123   : > { %v854_v57 = vadd.f32 %v853_v6, %v1868_v47  ;;  %v967_v28 = vmax.f32 %v850_v9, 0.0  ;;  %v940_v17 = vmax.f32 %v770_v44, 0.0 }
 0x124   : > { %v855_v53 = vpop.f32.mrf.mxu0  ;;  %1086 = vmatpush1.bf16.msra.mxu1 %v1004_v13 }
 0x125   : > { %v968_v59 = vmax.f32 %v854_v57, 0.0  ;;  %v856_v31 = vadd.f32 %v855_v53, %v1868_v47  ;;  %1087 = vmatprep.subr.bf16.mxu1 %v1003_v36  ;;  %v939_v47 = vmax.f32 %v766_v10, 0.0  ;;  %v998_v5 = vpack.c.bf16 %v940_v17, %v938_v30 }
 0x126   : > { %v1910_v8 = vpop.f32.mrf.mxu0 }
 0x127   : > { %v1912_v14 = vpack.c.bf16 %v968_v59, %v966_v15  ;;  %v969_v55 = vmax.f32 %v856_v31, 0.0  ;;  %v999_v4 = vpack.c.bf16 %v941_v49, %v939_v47 }
 0x128   : > { %v1916_v33 = vpop.f32.mrf.mxu0  ;;  %1088 = vmatpush1.bf16.msra.mxu1 %v1002_v58 }
 0x129   : > { %v1918_v25 = vpack.c.bf16 %v969_v55, %v967_v28  ;;  %1089 = vmatprep.subr.bf16.mxu1 %v1001_v50 }
 0x12a   : > { %v1920_v12 = vpop.f32.mrf.mxu0 }
 0x12c   : > { %v1922_v2 = vpop.f32.mrf.mxu0  ;;  %1090 = vmatpush1.bf16.msra.mxu1 %v1000_v52 }
 0x12d   : > { %1091 = vmatprep.subr.bf16.mxu1 %v999_v4 }
 0x12e   : > { %v1924_v16 = vpop.f32.mrf.mxu0 }
 0x130   : > { %v1926_v46 = vpop.f32.mrf.mxu0  ;;  %1092 = vmatpush1.bf16.msra.mxu1 %v998_v5 }
 0x131   : > { %1093 = vmatprep.subr.bf16.mxu1 %v1810_v51 }
 0x132   : > { %v1929_v35 = vpop.f32.mrf.mxu0 }
 0x134   : > { %v879_v39 = vpop.f32.mrf.mxu0  ;;  %1094 = vmatpush1.bf16.msra.mxu1 %v1806_v48 }
 0x135   : > { %1095 = vmatprep.subr.bf16.mxu1 %v1802_v37 }
 0x136   : > { %v883_v41 = vpop.f32.mrf.mxu0 }
 0x138   : > { %v885_v63 = vpop.f32.mrf.mxu0  ;;  %1096 = vmatpush1.bf16.msra.mxu1 %v1800_v34 }
 0x13a   : > { %v889_v3 = vpop.f32.mrf.mxu0 }
 0x13c   : > { %v891_v11 = vpop.f32.mrf.mxu0 }
 0x13e   : > { %v895_v26 = vpop.f32.mrf.mxu0 }
 0x13f   : > { %v896_v55 = vadd.f32 %v895_v26, %v1847_v21 }
 0x140   : > { %v897_v22 = vpop.f32.mrf.mxu0 }
 0x141   : > { %v898_v31 = vadd.f32 %v897_v22, %v1847_v21 }
 0x142   : > { %v901_v27 = vpop.f32.mrf.mxu0 }
 0x143   : > { %v902_v49 = vadd.f32 %v901_v27, %v1852_v24  ;;  %v983_v47 = vmax.f32 %v898_v31, 0.0  ;;  %v982_v27 = vmax.f32 %v896_v55, 0.0  ;;  %v1029_v31 = vpop.permute.xlu0 %1028 }
 0x144   : > { %v903_v29 = vpop.f32.mrf.mxu0 }
 0x145   : > { %v904_v38 = vadd.f32 %v903_v29, %v1852_v24  ;;  %v984_v52 = vmax.f32 %v902_v49, 0.0  ;;  %v2031_v24 = vld [vmem:[#allocation10_spill] sm:$0xff]  ;;  %v2032_v29 = vld [vmem:[#allocation9_spill] sm:$0xff] }
 0x146   : > { %v907_v40 = vpop.f32.mrf.mxu0  ;;  %v880_v30 = vadd.f32 %v879_v39, %v2031_v24  ;;  %v874_v21 = vadd.f32 %v1926_v46, %v2032_v29 }
 0x147   : > { %v908_v15 = vadd.f32 %v907_v40, %v1826_v60 }
 0x148   : > { %v909_v23 = vpop.f32.mrf.mxu0  ;;  %v977_v39 = vmax.f32 %v880_v30, 0.0 }
 0x149   : > { %v910_v36 = vadd.f32 %v909_v23, %v1826_v60  ;;  %v986_v19 = vmax.f32 %v908_v15, 0.0  ;;  %v886_v60 = vadd.f32 %v885_v63, %v2030_v32  ;;  %v878_v63 = vadd.f32 %v1929_v35, %v2031_v24  ;;  %v2033_v23 = vld [vmem:[#allocation12_spill] sm:$0xff] }
 0x14a   : > { %v913_v51 = vpop.f32.mrf.mxu0  ;;  %v866_v35 = vadd.f32 %v1920_v12, %v2033_v23  ;;  %v2035_v12 = vld [vmem:[#allocation6_spill] sm:$0xff]  ;;  %v2037_v15 = vld [vmem:[#allocation4_spill] sm:$0xff] }
 0x14b   : > { %v914_v57 = vadd.f32 %v913_v51, %v1830_v1  ;;  %v987_v44 = vmax.f32 %v910_v36, 0.0  ;;  %v979_v26 = vmax.f32 %v886_v60, 0.0  ;;  %v868_v51 = vadd.f32 %v1922_v2, %v2033_v23 }
 0x14c   : > { %v915_v43 = vpop.f32.mrf.mxu0  ;;  %v972_v36 = vmax.f32 %v866_v35, 0.0 }
 0x14d   : > { %v916_v48 = vadd.f32 %v915_v43, %v1830_v1  ;;  %v988_v61 = vmax.f32 %v914_v57, 0.0  ;;  %v985_v1 = vmax.f32 %v904_v38, 0.0 }
 0x14e   : > { %v919_v45 = vpop.f32.mrf.mxu0 }
 0x14f   : > { %v920_v34 = vadd.f32 %v919_v45, %v1816_v54  ;;  %v989_v62 = vmax.f32 %v916_v48, 0.0  ;;  %v1022_v4 = vpack.c.bf16 %v988_v61, %v986_v19  ;;  %v1021_v22 = vpack.c.bf16 %v985_v1, %v983_v47 }
 0x150   : > { %v921_v7 = vpop.f32.mrf.mxu0  ;;  %v976_v48 = vmax.f32 %v878_v63, 0.0 }
 0x151   : > { %v922_v37 = vadd.f32 %v921_v7, %v1816_v54  ;;  %v990_v59 = vmax.f32 %v920_v34, 0.0  ;;  %v1023_v28 = vpack.c.bf16 %v989_v62, %v987_v44  ;;  %v2034_v7 = vld [vmem:[#allocation11_spill] sm:$0xff]  ;;  %v1437_v62 = vmov 839922192  }
 0x152   : > { %v925_v13 = vpop.f32.mrf.mxu0  ;;  %v862_v46 = vadd.f32 %v1916_v33, %v2034_v7  ;;  %v860_v2 = vadd.f32 %v1910_v8, %v2034_v7  ;;  %v2036_v8 = vld [vmem:[#allocation5_spill] sm:$0xff] }
 0x153   : > { %v926_v6 = vadd.f32 %v925_v13, %v1820_v56  ;;  %v991_v53 = vmax.f32 %v922_v37, 0.0  ;;  %v975_v13 = vmax.f32 %v874_v21, 0.0  ;;  %v1071_v38 = vrot.slane %v2036_v8, %v2035_v12 }
 0x154   : > { %v927_v42 = vpop.f32.mrf.mxu0  ;;  %v970_v33 = vmax.f32 %v860_v2, 0.0 }
 0x155   : > { %v928_v9 = vadd.f32 %v927_v42, %v1820_v56  ;;  %v992_v10 = vmax.f32 %v926_v6, 0.0  ;;  %v2029_v56 = vld [vmem:[#allocation8_spill] sm:$0xff]  ;;  %v973_v6 = vmax.f32 %v868_v51, 0.0  ;;  %v1017_v34 = vpack.c.bf16 %v977_v39, %v975_v13 }
 0x156   : > { %v892_v50 = vadd.f32 %v891_v11, %v2029_v56  ;;  %v890_v17 = vadd.f32 %v889_v3, %v2029_v56  ;;  %v884_v11 = vadd.f32 %v883_v41, %v2030_v32  ;;  %v1020_v3 = vpack.c.bf16 %v984_v52, %v982_v27 }
 0x157   : > { %v993_v18 = vmax.f32 %v928_v9, 0.0  ;;  %v1024_v58 = vpack.c.bf16 %v992_v10, %v990_v59  ;;  %v872_v41 = vadd.f32 %v1924_v16, %v2032_v29  ;;  %v971_v16 = vmax.f32 %v862_v46, 0.0 }
 0x158   : > { %v981_v5 = vmax.f32 %v892_v50, 0.0  ;;  %v980_v40 = vmax.f32 %v890_v17, 0.0  ;;  %v978_v45 = vmax.f32 %v884_v11, 0.0  ;;  %v1014_v10 = vpack.c.bf16 %v972_v36, %v970_v33 }
 0x159   : > { %v1025_v54 = vpack.c.bf16 %v993_v18, %v991_v53  ;;  %v974_v42 = vmax.f32 %v872_v41, 0.0  ;;  %v1015_v57 = vpack.c.bf16 %v973_v6, %v971_v16  ;;  %v1031_v53 = vunpack.c.l.s4 %v1437_v62 }
 0x15a   : > { %v1019_v43 = vpack.c.bf16 %v981_v5, %v979_v26  ;;  %v1018_v37 = vpack.c.bf16 %v980_v40, %v978_v45  ;;  %v1122_v17 = vstv %s407_s16  ;;  %v1178_v6 = vsub.s32 0, %v2037_v15 }
 0x15b   : > { %1097 = vmatprep.subr.bf16.mxu1 %v1025_v54  ;;  %v1016_v9 = vpack.c.bf16 %v976_v48, %v974_v42  ;;  %v1032_v18 = vunpack.c.0.s8 %v1031_v53  ;;  %v2038_v54 = vld [vmem:[#allocation3_spill] sm:$0xff]  ;;  %v2039_v62 = vlaneseq }
 0x15c   : > { %1098 = vmatpush2.bf16.msra.mxu1 %v1024_v58 }
 0x15d   : > { %1099 = vmatprep.subr.bf16.mxu1 %v1023_v28  ;;  %v1035_v59 = vsub.s32 %v1032_v18, %v2037_v15  ;;  %vm1173_vm6 = vcmp.lt.s32.totalorder %v2039_v62, 256  ;;  %v1409_v18 = vld [vmem:[%s1511_s11] sm:$0xff] }
 0x15f   : > { %v1036_v44 = vrot.slane %v1029_v31, %v1035_v59 }
 0x160   : > { %1100 = vmatpush2.bf16.msra.mxu1 %v1022_v4 }
 0x161   : > { %1101 = vmatprep.subr.bf16.mxu1 %v1021_v22  ;;  %v1038_v49 = vmul.f32 %v1036_v44, %v2038_v54 }
 0x164   : > { %1102 = vmatpush2.bf16.msra.mxu1 %v1020_v3 }
 0x165   : > { %1103 = vmatprep.subr.bf16.mxu1 %v1019_v43 }
 0x168   : > { %1104 = vmatpush2.bf16.msra.mxu1 %v1018_v37 }
 0x169   : > { %1105 = vmatprep.subr.bf16.mxu1 %v1017_v34 }
 0x16c   : > { %1106 = vmatpush2.bf16.msra.mxu1 %v1016_v9 }
 0x16d   : > { %1107 = vmatprep.subr.bf16.mxu1 %v1015_v57 }
 0x170   : > { %1108 = vmatpush2.bf16.msra.mxu1 %v1014_v10 }
 0x171   : > { %1109 = vmatprep.subr.bf16.mxu1 %v1918_v25  ;;  %v1040_v25 = vcombine.high %v1038_v49, %v1038_v49 }
 0x174   : > { %1110 = vmatpush2.bf16.msra.mxu1 %v1912_v14  ;;  %v1042_v14 = vsel %vm668_vm0, %v1038_v49, 0.0 }
 0x175   : > { %1111 = vmatprep.subr.bf16.mxu1 %v1894_v0  ;;  %v1049_v0 = vsel %vm668_vm0, %v1040_v25, 0.0  ;;  %v1043_v61 = vrot.slane %v1042_v14, 4 }
 0x176   : > { %v1050_v58 = vrot.slane %v1049_v0, 4 }
 0x177   : > { %v1044_v56 = vadd.f32 %v1043_v61, %v1042_v14 }
 0x178   : > { %1112 = vmatpush2.bf16.msra.mxu1 %v1888_v20  ;;  %v1051_v50 = vadd.f32 %v1050_v58, %v1049_v0 }
 0x179   : > { %v1045_v20 = vrot.slane %v1044_v56, 2 }
 0x17a   : > { %v1052_v1 = vrot.slane %v1051_v50, 2 }
 0x17b   : > { %1114 = vmatmul.mubr.bf16.vlgmr.msra.gmra.mxu1 %v1071_v38  ;;  %v1046_v28 = vadd.f32 %v1045_v20, %v1044_v56 }
 0x17c   : > { %v1053_v55 = vadd.f32 %v1052_v1, %v1051_v50 }
 0x17d   : > { %v1047_v19 = vrot.slane %v1046_v28, 1 }
 0x17e   : > { %v1054_v32 = vrot.slane %v1053_v55, 1 }
 0x17f   : > { %v1048_v60 = vadd.f32 %v1047_v19, %v1046_v28 }
 0x180   : > { %v1055_v4 = vadd.f32 %v1054_v32, %v1053_v55 }
 0x23b   : > { %v1115_v47 = vpop.f32.mrf.mxu1 }
 0x23c   : > { %v1116_v52 = vadd.f32 %v1115_v47, %v1048_v60 }
 0x23d   : > { %v1117_v24 = vpop.f32.mrf.mxu1 }
 0x23e   : > { %v1123_v30 = vadd.f32 %v1122_v17, %v1116_v52  ;;  %v1118_v5 = vadd.f32 %v1117_v24, %v1055_v4 }
 0x23f   : > { %v1119_v22 = vpop.f32.mrf.mxu1 }
 0x240   : > { %v1127_v11 = vmin.f32 %v1123_v30, 20.0  ;;  %v1124_v27 = vadd.f32 %v1122_v17, %v1118_v5  ;;  %vm1125_vm3 = vcmp.gt.f32.partialorder %v1123_v30, 20.0 }
 0x241   : > { %v1120_v29 = vpop.f32.mrf.mxu1 }
 0x242   : > { %v1129_v21 = vmul.f32 1.442695, %v1127_v11  ;;  %v1128_v26 = vmin.f32 %v1124_v27, 20.0  ;;  %vm1126_vm5 = vcmp.gt.f32.partialorder %v1124_v27, 20.0 }
 0x244   : > { %1401 = vpow2.f32 %v1129_v21  ;;  %v1131_v63 = vmul.f32 1.442695, %v1128_v26 }
 0x246   : > { %1403 = vpow2.f32 %v1131_v63 }
 0x251   : > { %v1402_v40 = vpop.eup %1401 }
 0x252   : > { %v1133_v3 = vadd.f32 1.0, %v1402_v40  ;;  %v1136_v39 = vmul.f32 -0.5, %v1402_v40  ;;  %v1139_v45 = vand.u32 2147483647, %v1402_v40 }
 0x253   : > { %v1404_v23 = vpop.eup %1403 }
 0x254   : > { %1405 = vlog2.f32 %v1133_v3  ;;  %v1142_v51 = vadd.f32 1.0, %v1404_v23  ;;  %v1145_v43 = vmul.f32 -0.5, %v1404_v23  ;;  %v1137_v41 = vadd.f32 1.0, %v1136_v39 }
 0x255   : > { %v1148_v13 = vand.u32 2147483647, %v1404_v23  ;;  %vm1140_vm2 = vcmp.lt.f32.partialorder %v1139_v45, 0.0004427343 }
 0x256   : > { %1407 = vlog2.f32 %v1142_v51  ;;  %v1146_v7 = vadd.f32 1.0, %v1145_v43  ;;  %v1138_v48 = vmul.f32 %v1402_v40, %v1137_v41 }
 0x257   : > { %vm1149_vm4 = vcmp.lt.f32.partialorder %v1148_v13, 0.0004427343 }
 0x258   : > { %v1147_v42 = vmul.f32 %v1404_v23, %v1146_v7 }
 0x261   : > { %v1406_v46 = vpop.eup %1405 }
 0x262   : > { %v1135_v35 = vmul.f32 0.6931472, %v1406_v46 }
 0x263   : > { %v1408_v37 = vpop.eup %1407 }
 0x264   : > { %v1141_v34 = vsel %vm1140_vm2, %v1138_v48, %v1135_v35  ;;  %v1144_v2 = vmul.f32 0.6931472, %v1408_v37 }
 0x265   : > { %v1151_v16 = vsel %vm1125_vm3, %v1123_v30, %v1141_v34 }
 0x266   : > { %v1150_v36 = vsel %vm1149_vm4, %v1147_v42, %v1144_v2  ;;  %v1179_v57 = vrot.slane %v1151_v16, %v1178_v6 }
 0x267   : > { %v1152_v9 = vsel %vm1126_vm5, %v1124_v27, %v1150_v36 }
 0x268   : > { %v1155_v33 = vcombine.low %v1151_v16, %v1152_v9  ;;  %v1183_v10 = vrot.slane %v1152_v9, %v1178_v6 }
 0x26a   : > { %v1162_v8 = vrot.slane %v1155_v33, %v2035_v12  ;;  %v1186_v38 = vcombine.low %v1179_v57, %v1183_v10 }
 0x26c   : > { %v1169_v53 = vrot.slane %v1162_v8, %v2035_v12  ;;  %v1188_v15 = vmul.f32 %v1409_v18, %v1186_v38 }
 0x26e   : > { %1175 = vst.msk [vmem:[%s329_s20] sm:$0x3] %vm1173_vm6, %v1169_v53  ;;  %1189 = vst [vmem:[%s339_s23] sm:$0xff] %v1188_v15 }
 0x26f PF: > { %s19_s28 = sadd.s32 1, %s1432_s28   ;;  %s2040_s26 = smov %s1428_s27 }
 0x270   : > { %p16_p5 = scmp.ge.s32.totalorder %s19_s28, 4   ;;  %s2041_s27 = smov %s2043_s5 }
 0x272   :  { %18 = sbr.rel (!%p16_p5) target bundleno = 2 (0x2), region = 86 }

</bundles_post_ra>
